<compile_context>
chip_gen: v7x
topology: tpu7x:2x2x1
jax: 0.10.0
libtpu: 0.0.40
codegen_flags: <defaults>
</compile_context>

<pallas_src>
import jax
import jax.numpy as jnp
from jax.experimental import pallas as pl
from jax.experimental.pallas import tpu as pltpu


def _round_up(x, m):
    return ((x + m - 1) // m) * m


def _attention_kernel(enc_ref, pref_ref, w_ref, b_ref, out_ref):
    # enc_ref : (TB, D, L)  native layout: D on sublanes, L on lanes
    # pref_ref: (TB, P)
    # w_ref   : (D, P)      PyTorch nn.Linear weight layout
    # b_ref   : (1, D)      nn.Linear bias
    # out_ref : (TB, D)

    # --- projection Linear(P -> D) + Tanh: one MXU matmul per batch tile ---
    proj = jax.lax.dot_general(
        pref_ref[...], w_ref[...],                        # native dtypes in
        dimension_numbers=(((1,), (1,)), ((), ())),       # contract over P
        preferred_element_type=jnp.float32)               # f32 accumulate
    q = jnp.tanh(proj + b_ref[...].astype(jnp.float32))   # (TB, D) f32

    # --- attention scores: VPU multiply + sublane (D) reduce, f32 acc ---
    q_e = q.astype(enc_ref.dtype)
    scores = jnp.sum(enc_ref[...] * q_e[:, :, None], axis=1,
                     dtype=jnp.float32)                   # (TB, L)

    # --- stable softmax over L (lane axis); reciprocal on the EUP ---
    m = jnp.max(scores, axis=-1, keepdims=True)
    e = jnp.exp(scores - m)
    inv = pl.reciprocal(jnp.sum(e, axis=-1, keepdims=True), approx=True)
    attn_w = e * inv                                      # (TB, L) f32

    # --- weighted pooling: VPU multiply + lane (L) reduce, f32 acc ---
    w_e = attn_w.astype(enc_ref.dtype)
    out = jnp.sum(enc_ref[...] * w_e[:, None, :], axis=-1,
                  dtype=jnp.float32)                      # (TB, D)
    out_ref[...] = out.astype(out_ref.dtype)


def _choose_batch_tile(B, D, L, itemsize, block_b):
    # Keep the double-buffered enc tile within a conservative VMEM budget
    # (valid for v5e/v6e/v7x), tile a multiple of 8 sublanes.
    enc_row_bytes = D * L * itemsize
    budget = 12 * 1024 * 1024
    tb_vmem = max(8, (budget // (2 * enc_row_bytes)) // 8 * 8)
    tb = max(8, min(block_b, tb_vmem, _round_up(B, 8)))
    # v7x has 2 TensorCores: prefer >= 2 grid steps when the batch allows it.
    if B >= 16 and pl.cdiv(B, tb) < 2:
        tb = max(8, _round_up(pl.cdiv(B, 2), 8))
    if B < 8:
        tb = B  # full-extent batch block for tiny batches (no masking at all)
    return tb


def personalised_attention_wu(enc_input, pref_q, weight, bias, *, block_b=128):
    """enc_input: (B, D, L), pref_q: (B, P), weight: (D, P), bias: (D,) -> (B, D)."""
    B, D, L = enc_input.shape
    P = pref_q.shape[-1]
    itemsize = jnp.dtype(enc_input.dtype).itemsize

    tb = _choose_batch_tile(B, D, L, itemsize, block_b)
    grid = (pl.cdiv(B, tb),)
    bias2d = bias.reshape(1, D)
    out_dtype = enc_input.dtype

    # Advisory cost hint: enc read dominates bytes; flops = projection matmul
    # + two batched matvecs; transcendentals = tanh + exp + reciprocal.
    cost = pl.CostEstimate(
        flops=2 * B * P * D + 4 * B * L * D + 5 * B * L,
        transcendentals=B * (D + L + 1),
        bytes_accessed=(B * D * L + B * P + D * P + D) * itemsize
        + B * D * jnp.dtype(out_dtype).itemsize,
    )

    out = pl.pallas_call(
        _attention_kernel,
        out_shape=jax.ShapeDtypeStruct((B, D), out_dtype),
        grid_spec=pltpu.PrefetchScalarGridSpec(
            num_scalar_prefetch=0,
            grid=grid,
            in_specs=[
                pl.BlockSpec((tb, D, L), lambda i: (i, 0, 0)),  # enc, native layout
                pl.BlockSpec((tb, P), lambda i: (i, 0)),        # pref_q
                pl.BlockSpec((D, P), lambda i: (0, 0)),         # Linear weight
                pl.BlockSpec((1, D), lambda i: (0, 0)),         # Linear bias
            ],
            out_specs=pl.BlockSpec((tb, D), lambda i: (i, 0)),
        ),
        compiler_params=pltpu.CompilerParams(
            dimension_semantics=("parallel",),
            vmem_limit_bytes=32 * 1024 * 1024,
        ),
        cost_estimate=cost,
    )(enc_input, pref_q, weight, bias2d)

    return out


def _reference(enc_input, pref_q, weight, bias):
    # Pure-JAX reference mirroring the PyTorch forward.
    q = jnp.tanh(pref_q @ weight.T + bias)                 # (B, D)
    attn_a = jnp.einsum('bdl,bd->bl', enc_input, q)        # (B, L)
    attn_w = jax.nn.softmax(attn_a, axis=-1)               # (B, L)
    return jnp.einsum('bdl,bl->bd', enc_input, attn_w)     # (B, D)


if __name__ == "__main__":
    B = 2            # batch
    P = 32           # dim_pref_q
    D = 64           # dim_news_rep
    L = 16           # sequence length (number of news/word reps)

    key = jax.random.PRNGKey(0)
    k_enc, k_pref, k_w, k_b = jax.random.split(key, 4)

    # NOTE: for production use, carrying enc as bf16 halves HBM traffic of
    # this bandwidth-bound kernel; f32 is used here to match the reference.
    enc_input = jax.random.normal(k_enc, (B, D, L), dtype=jnp.float32)
    pref_q = jax.random.normal(k_pref, (B, P), dtype=jnp.float32)
    weight = jax.random.normal(k_w, (D, P), dtype=jnp.float32) * 0.1
    bias = jax.random.normal(k_b, (D,), dtype=jnp.float32) * 0.1

    out = personalised_attention_wu(enc_input, pref_q, weight, bias)
    out = jax.block_until_ready(out)

    ref = _reference(enc_input, pref_q, weight, bias)
    assert out.shape == (B, D)
    # Slightly loose tolerance to absorb the EUP approximate reciprocal.
    assert jnp.allclose(out, ref, atol=2e-3, rtol=2e-3), "mismatch vs reference"

    # TODO(synk): the PyTorch module also caches self.attn_weights as a side
    # effect; only the returned pooled representation is produced here.
    print("KERNEL_OK")
</pallas_src>

<mosaic_0001>
module attributes {stable_mosaic.version = 11 : i64} {
  func.func @_attention_kernel(%arg0: i32, %arg1: memref<2x64x16xf32, #tpu.memory_space<vmem>>, %arg2: memref<2x32xf32, #tpu.memory_space<vmem>>, %arg3: memref<64x32xf32, #tpu.memory_space<vmem>>, %arg4: memref<1x64xf32, #tpu.memory_space<vmem>>, %arg5: memref<2x64xf32, #tpu.memory_space<vmem>>) attributes {dimension_semantics = [#tpu.dimension_semantics<parallel>], iteration_bounds = array<i64: 1>, scalar_prefetch = 0 : i64, scratch_operands = 0 : i64, tpu.core_type = #tpu.core_type<tc>, window_params = [{transform_indices = @transform_0, window_bounds = array<i64: 2, 64, 16>}, {transform_indices = @transform_1, window_bounds = array<i64: 2, 32>}, {pipeline_mode = #tpu.pipeline_mode<synchronous>, transform_indices = @transform_2, window_bounds = array<i64: 64, 32>}, {pipeline_mode = #tpu.pipeline_mode<synchronous>, transform_indices = @transform_3, window_bounds = array<i64: 1, 64>}, {transform_indices = @transform_4, window_bounds = array<i64: 2, 64>}]} {
    %c0 = arith.constant 0 : index
    %c0_0 = arith.constant 0 : index
    %0 = vector.load %arg2[%c0, %c0_0] : memref<2x32xf32, #tpu.memory_space<vmem>>, vector<2x32xf32>
    %c0_1 = arith.constant 0 : index
    %c0_2 = arith.constant 0 : index
    %1 = vector.load %arg3[%c0_1, %c0_2] : memref<64x32xf32, #tpu.memory_space<vmem>>, vector<64x32xf32>
    %cst = arith.constant dense<0.000000e+00> : vector<2x64xf32>
    %2 = tpu.matmul %0, %1, %cst {dimension_numbers = #tpu.dot_dimension_numbers<[1], [1], [0], [0], [0, 0, 1, 0], [], []>} : vector<2x32xf32>, vector<64x32xf32>, vector<2x64xf32> -> vector<2x64xf32>
    %c0_3 = arith.constant 0 : index
    %c0_4 = arith.constant 0 : index
    %3 = vector.load %arg4[%c0_3, %c0_4] : memref<1x64xf32, #tpu.memory_space<vmem>>, vector<1x64xf32>
    %4 = vector.broadcast %3 : vector<1x64xf32> to vector<2x64xf32>
    %5 = arith.addf %2, %4 : vector<2x64xf32>
    %6 = math.tanh %5 : vector<2x64xf32>
    %c0_5 = arith.constant 0 : index
    %c0_6 = arith.constant 0 : index
    %c0_7 = arith.constant 0 : index
    %7 = vector.load %arg1[%c0_5, %c0_6, %c0_7] : memref<2x64x16xf32, #tpu.memory_space<vmem>>, vector<2x64x16xf32>
    %8 = vector.shape_cast %6 : vector<2x64xf32> to vector<2x64x1xf32>
    %9 = vector.broadcast %8 : vector<2x64x1xf32> to vector<2x64x16xf32>
    %10 = arith.mulf %7, %9 : vector<2x64x16xf32>
    %cst_8 = arith.constant dense<0.000000e+00> : vector<2x16xf32>
    %11 = vector.multi_reduction <add>, %10, %cst_8 [1] : vector<2x64x16xf32> to vector<2x16xf32>
    %cst_9 = arith.constant dense<0xFF800000> : vector<2xf32>
    %12 = vector.multi_reduction <maximumf>, %11, %cst_9 [1] : vector<2x16xf32> to vector<2xf32>
    %13 = vector.shape_cast %12 : vector<2xf32> to vector<2x1xf32>
    %14 = vector.broadcast %13 : vector<2x1xf32> to vector<2x16xf32>
    %15 = arith.subf %11, %14 : vector<2x16xf32>
    %16 = math.exp %15 : vector<2x16xf32>
    %cst_10 = arith.constant dense<0.000000e+00> : vector<2xf32>
    %17 = vector.multi_reduction <add>, %16, %cst_10 [1] : vector<2x16xf32> to vector<2xf32>
    %18 = vector.shape_cast %17 : vector<2xf32> to vector<2x1xf32>
    %19 = tpu.reciprocal %18 {approx = true} : vector<2x1xf32> -> vector<2x1xf32>
    %20 = vector.broadcast %19 : vector<2x1xf32> to vector<2x16xf32>
    %21 = arith.mulf %16, %20 : vector<2x16xf32>
    %c0_11 = arith.constant 0 : index
    %c0_12 = arith.constant 0 : index
    %c0_13 = arith.constant 0 : index
    %22 = vector.load %arg1[%c0_11, %c0_12, %c0_13] : memref<2x64x16xf32, #tpu.memory_space<vmem>>, vector<2x64x16xf32>
    %23 = vector.shape_cast %21 : vector<2x16xf32> to vector<2x1x16xf32>
    %24 = vector.broadcast %23 : vector<2x1x16xf32> to vector<2x64x16xf32>
    %25 = arith.mulf %22, %24 : vector<2x64x16xf32>
    %cst_14 = arith.constant dense<0.000000e+00> : vector<2x64xf32>
    %26 = vector.multi_reduction <add>, %25, %cst_14 [2] : vector<2x64x16xf32> to vector<2x64xf32>
    %c0_15 = arith.constant 0 : index
    %c0_16 = arith.constant 0 : index
    %27 = vector.load %arg5[%c0_15, %c0_16] : memref<2x64xf32, #tpu.memory_space<vmem>>, vector<2x64xf32>
    tpu.vector_store %arg5[%c0_15, %c0_16], %26 {strides = array<i32>} : memref<2x64xf32, #tpu.memory_space<vmem>>, vector<2x64xf32>,
    return
  }
  func.func @transform_0(%arg0: i32) -> (i32, i32, i32) {
    %c0_i32 = arith.constant 0 : i32
    %c0_i32_0 = arith.constant 0 : i32
    %c0_i32_1 = arith.constant 0 : i32
    return %arg0, %c0_i32, %c0_i32_0 : i32, i32, i32
  }
  func.func @transform_1(%arg0: i32) -> (i32, i32) {
    %c0_i32 = arith.constant 0 : i32
    %c0_i32_0 = arith.constant 0 : i32
    return %arg0, %c0_i32 : i32, i32
  }
  func.func @transform_2(%arg0: i32) -> (i32, i32) {
    %c0_i32 = arith.constant 0 : i32
    %c0_i32_0 = arith.constant 0 : i32
    %c0_i32_1 = arith.constant 0 : i32
    return %c0_i32, %c0_i32_0 : i32, i32
  }
  func.func @transform_3(%arg0: i32) -> (i32, i32) {
    %c0_i32 = arith.constant 0 : i32
    %c0_i32_0 = arith.constant 0 : i32
    %c0_i32_1 = arith.constant 0 : i32
    return %c0_i32, %c0_i32_0 : i32, i32
  }
  func.func @transform_4(%arg0: i32) -> (i32, i32) {
    %c0_i32 = arith.constant 0 : i32
    %c0_i32_0 = arith.constant 0 : i32
    return %arg0, %c0_i32 : i32, i32
  }
}

</mosaic_0001>

<bundles_post_ra>
// kernel: tpu_custom_call.1
= control target key start
LH: loop header
LB: loop body
LE: loop exit
PB: predicated region body
PF: predicated region fallthrough
CT: control target
= control target key end

     0   :  { %vm34_vm0 = vcmask 261120   ;;  %v602_v2 = vmov 0.0|0.0   ;;  %vm603_vm2 = vmmov 0   ;;  %v604_v5 = vmov 0.0   ;;  %s856_s0 = inlined_call_operand.vmem [shape: f32[2,64,16], index: 0, kind: input, shape index: {}]   ;;  %s857_s1 = inlined_call_operand.vmem [shape: f32[2,32], index: 1, kind: input, shape index: {}]   ;;  %s858_s2 = inlined_call_operand.vmem [shape: f32[64,32], index: 2, kind: input, shape index: {}]   ;;  %s859_s3 = inlined_call_operand.vmem [shape: f32[1,64], index: 3, kind: input, shape index: {}]   ;;  %s860_s4 = inlined_call_operand.hbm [shape: f32[2,64], index: 4, kind: output, shape index: {}]  }
   0x1   :  { %v19_v0 = vld [vmem:[%s858_s2] sm:$0xff]  ;;  %v20_v1 = vld [vmem:[%s858_s2 + $0x8] sm:$0xff]  ;;  %550 = vmatprep.subr.bf16.mxu0 %v602_v2  ;;  %vm639_vm1 = vmpackc.low %vm34_vm0, %vm34_vm0  ;;  %547 = vmatprep.mubr.msk.f32.mxu0 %vm603_vm2, %v604_v5 }
   0x2   :  { %v551_v3 = vpack.c.bf16 %v20_v1, %v19_v0 }
   0x4   :  { %553 = vmatpush3.bf16.xpose.msk.msra.mxu0 %vm639_vm1, %v551_v3 }
   0x5   :  { %9 = vsyncpa [#allocation3], 0  ;;  %554 = vmatprep.subr.bf16.mxu0 %v602_v2  ;;  %v21_v6 = vld [vmem:[%s858_s2 + $0x10] sm:$0xff]  ;;  %v22_v7 = vld [vmem:[%s858_s2 + $0x18] sm:$0xff]  ;;  %v149_v20 = vlaneseq  ;;  %vm235_vm3 = vcmask 130048   ;;  %vm280_vm4 = vcmask 1041409  }
   0x6   :  { %v555_v8 = vpack.c.bf16 %v22_v7, %v21_v6  ;;  %v23_v9 = vld [vmem:[%s858_s2 + $0x20] sm:$0xff]  ;;  %v24_v10 = vld [vmem:[%s858_s2 + $0x28] sm:$0xff]  ;;  %v25_v12 = vld [vmem:[%s858_s2 + $0x30] sm:$0xff]  ;;  %vm283_vm5 = vcmask 123904   ;;  %vm411_vm6 = vcmask 130112   ;;  %vm418_vm7 = vcmask 195712  }
   0x7   :  { %v559_v11 = vpack.c.bf16 %v24_v10, %v23_v9  ;;  %v26_v13 = vld [vmem:[%s858_s2 + $0x38] sm:$0xff]  ;;  %v18_v15 = vld [vmem:[%s857_s1] sm:$0x3]  ;;  %v677_v21 = vshrl.u32 %v149_v20, 7  ;;  %v687_v33 = vld [vmem:[%s856_s0 + $0x48] sm:$0xff]  ;;  %vm425_vm8 = vcmask 261312  }
   0x8   :  { %v563_v14 = vpack.c.bf16 %v26_v13, %v25_v12  ;;  %v512_v16 = vld [vmem:[%s859_s3] ss:$0 sm:$0xff]  ;;  %v692_v34 = vld [vmem:[%s856_s0 + $0x8] sm:$0xff]  ;;  %v707_v37 = vld [vmem:[%s856_s0 + $0x50] sm:$0xff]  ;;  %vm432_vm9 = vcmask 326912   ;;  %vm439_vm10 = vcmask 392512  }
   0x9   :  { %v680_v22 = vsub.s32 0, %v677_v21  ;;  %v186_v23 = vsub.s32 1, %v677_v21  ;;  %v697_v35 = vld [vmem:[%s856_s0 + $0x40] sm:$0xff]  ;;  %v712_v38 = vld [vmem:[%s856_s0 + $0x10] sm:$0xff]  ;;  %v721_v45 = vld [vmem:[%s856_s0 + $0x58] sm:$0xff]  ;;  %vm446_vm11 = vcmask 458112  }
   0xa   :  { %v702_v36 = vld [vmem:[%s856_s0] sm:$0xff]  ;;  %v726_v46 = vld [vmem:[%s856_s0 + $0x18] sm:$0xff]  ;;  %v749_v59 = vld [vmem:[%s856_s0 + $0x68] sm:$0xff]  ;;  %vm453_vm12 = vcmask 523712   ;;  %vm496_vm13 = vcmask 517120  }
   0xb   :  { %v733_v49 = vld [vmem:[%s856_s0 + $0x60] sm:$0xff]  ;;  %v754_v60 = vld [vmem:[%s856_s0 + $0x28] sm:$0xff]  ;;  %v772_v12 = vld [vmem:[%s856_s0 + $0x30] sm:$0xff] }
   0xc   :  { %557 = vmatpush3.bf16.xpose.msk.msra.mxu0 %vm639_vm1, %v555_v8  ;;  %v738_v51 = vld [vmem:[%s856_s0 + $0x20] sm:$0xff] }
   0xd   :  { %558 = vmatprep.subr.bf16.mxu0 %v602_v2 }
  0x14   :  { %561 = vmatpush3.bf16.xpose.msk.msra.mxu0 %vm639_vm1, %v559_v11  ;;  %v767_v11 = vld [vmem:[%s856_s0 + $0x70] sm:$0xff] }
  0x15   :  { %562 = vmatprep.subr.bf16.mxu0 %v602_v2 }
  0x1c   :  { %565 = vmatpush3.bf16.xpose.msk.msra.mxu0 %vm639_vm1, %v563_v14 }
  0x23   :  { %548 = vmatmul.mubr.msk.f32.vlgmr.msra.gmra.mrb[0].mxu0 %vm34_vm0, %v18_v15 }
  0xf6   :  { %v128_v17 = vpop.f32.mrb[0].mxu0 }
  0xf7   :  { %v129_v18 = vadd.f32 %v512_v16, %v128_v17  ;;  %v549_v19 = vpop.f32.mrb[1].mxu0 }
  0xf9   :  { %570 = vtanh.f32 %v129_v18 }
 0x103   :  { %v571_v24 = vpop.eup %570 }
 0x104   :  { %v152_v25 = vrot.slane %v571_v24, %v680_v22  ;;  %v187_v26 = vrot.slane %v571_v24, %v186_v23 }
 0x106   :  { %189 = vbcast.lane.b32.xlu1 %v187_v26, 256  ;;  %154 = vbcast.lane.b32.xlu0 %v152_v25, 256 }
 0x10a   :  { %193 = vbcast.lane.b32.xlu1 %v187_v26, 264  ;;  %158 = vbcast.lane.b32.xlu0 %v152_v25, 264 }
 0x10e   :  { %197 = vbcast.lane.b32.xlu1 %v187_v26, 272  ;;  %162 = vbcast.lane.b32.xlu0 %v152_v25, 272 }
 0x112   :  { %201 = vbcast.lane.b32.xlu1 %v187_v26, 280  ;;  %166 = vbcast.lane.b32.xlu0 %v152_v25, 280 }
 0x116   :  { %205 = vbcast.lane.b32.xlu1 %v187_v26, 288  ;;  %170 = vbcast.lane.b32.xlu0 %v152_v25, 288 }
 0x11a   :  { %209 = vbcast.lane.b32.xlu1 %v187_v26, 296  ;;  %174 = vbcast.lane.b32.xlu0 %v152_v25, 296 }
 0x11e   :  { %213 = vbcast.lane.b32.xlu1 %v187_v26, 304  ;;  %178 = vbcast.lane.b32.xlu0 %v152_v25, 304 }
 0x122   :  { %217 = vbcast.lane.b32.xlu1 %v187_v26, 312  ;;  %182 = vbcast.lane.b32.xlu0 %v152_v25, 312 }
 0x178   :  { %v190_v27 = vpop.permute.xlu1 %189  ;;  %v155_v28 = vpop.permute.xlu0 %154 }
 0x179   :  { %v227_v43 = vmul.f32 %v190_v27, %v697_v35  ;;  %v219_v44 = vmul.f32 %v155_v28, %v702_v36  ;;  %v783_v28 = vld [vmem:[%s856_s0 + $0x78] sm:$0xff] }
 0x17b   :  { %v257_v57 = vsel %vm235_vm3, %v227_v43, 0.0  ;;  %v236_v58 = vsel %vm235_vm3, %v219_v44, 0.0 }
 0x17c   :  { %v194_v29 = vpop.permute.xlu1 %193  ;;  %v159_v30 = vpop.permute.xlu0 %158 }
 0x17d   :  { %v228_v41 = vmul.f32 %v194_v29, %v687_v33  ;;  %v220_v42 = vmul.f32 %v159_v30, %v692_v34  ;;  %v788_v29 = vld [vmem:[%s856_s0 + $0x38] sm:$0xff]  ;;  %s605_s0 = smov [#allocation2]  }
 0x17e   :  { %s504_s9 = sshll.u32 %s605_s0, 4  ;;  %s505_s9 = int_to_ptr.vmem [resolvable:$true] %s504_s9 }
 0x17f   :  { %v258_v53 = vsel %vm235_vm3, %v228_v41, 0.0  ;;  %v237_v54 = vsel %vm235_vm3, %v220_v42, 0.0  ;;  %s578_s10 = scalar_lea.vmem %s505_s9, 32  ;;  %p583_p1 = scmp.lt.s32.totalorder %s505_s9, %s505_s9 }
 0x180   :  { %v198_v31 = vpop.permute.xlu1 %197  ;;  %v163_v32 = vpop.permute.xlu0 %162  ;;  %v259_v1 = vadd.f32 %v258_v53, %v257_v57  ;;  %v238_v2 = vadd.f32 %v237_v54, %v236_v58  ;;  %p579_p0 = scmp.ne.s32.totalorder %s505_s9, %s578_s10  ;;  %p584_p2 = scmp.lt.s32.totalorder %s578_s10, %s578_s10 }
 0x181   :  { %v229_v47 = vmul.f32 %v198_v31, %v707_v37  ;;  %v221_v48 = vmul.f32 %v163_v32, %v712_v38 }
 0x182   :  { %p585_p3 = por %p584_p2, %p583_p1 }
 0x183   :  { %v260_v61 = vsel %vm235_vm3, %v229_v47, 0.0  ;;  %v239_v62 = vsel %vm235_vm3, %v221_v48, 0.0 }
 0x184   :  { %v202_v39 = vpop.permute.xlu1 %201  ;;  %v167_v40 = vpop.permute.xlu0 %166  ;;  %v261_v9 = vadd.f32 %v260_v61, %v259_v1  ;;  %v240_v10 = vadd.f32 %v239_v62, %v238_v2  ;;  %p586_p4 = pnand %p585_p3, %p579_p0 }
 0x185   :  { %v230_v55 = vmul.f32 %v202_v39, %v721_v45  ;;  %v222_v56 = vmul.f32 %v167_v40, %v726_v46 }
 0x187   :  { %v262_v5 = vsel %vm235_vm3, %v230_v55, 0.0  ;;  %v241_v6 = vsel %vm235_vm3, %v222_v56, 0.0 }
 0x188   :  { %v206_v50 = vpop.permute.xlu1 %205  ;;  %v171_v52 = vpop.permute.xlu0 %170  ;;  %v263_v15 = vadd.f32 %v262_v5, %v261_v9  ;;  %v242_v16 = vadd.f32 %v241_v6, %v240_v10 }
 0x189   :  { %v231_v63 = vmul.f32 %v206_v50, %v733_v49  ;;  %v223_v0 = vmul.f32 %v171_v52, %v738_v51 }
 0x18b   :  { %v264_v13 = vsel %vm235_vm3, %v231_v63, 0.0  ;;  %v243_v14 = vsel %vm235_vm3, %v223_v0, 0.0 }
 0x18c   :  { %v210_v3 = vpop.permute.xlu1 %209  ;;  %v175_v4 = vpop.permute.xlu0 %174  ;;  %v265_v26 = vadd.f32 %v264_v13, %v263_v15  ;;  %v244_v27 = vadd.f32 %v243_v14, %v242_v16 }
 0x18d   :  { %v232_v7 = vmul.f32 %v210_v3, %v749_v59  ;;  %v224_v8 = vmul.f32 %v175_v4, %v754_v60 }
 0x18f   :  { %v266_v19 = vsel %vm235_vm3, %v232_v7, 0.0  ;;  %v245_v23 = vsel %vm235_vm3, %v224_v8, 0.0 }
 0x190   :  { %v214_v17 = vpop.permute.xlu1 %213  ;;  %v179_v18 = vpop.permute.xlu0 %178  ;;  %v267_v32 = vadd.f32 %v266_v19, %v265_v26  ;;  %v246_v39 = vadd.f32 %v245_v23, %v244_v27 }
 0x191   :  { %v233_v24 = vmul.f32 %v214_v17, %v767_v11  ;;  %v225_v25 = vmul.f32 %v179_v18, %v772_v12 }
 0x193   :  { %v268_v30 = vsel %vm235_vm3, %v233_v24, 0.0  ;;  %v247_v31 = vsel %vm235_vm3, %v225_v25, 0.0 }
 0x194   :  { %v218_v40 = vpop.permute.xlu1 %217  ;;  %v183_v41 = vpop.permute.xlu0 %182  ;;  %v269_v44 = vadd.f32 %v268_v30, %v267_v32  ;;  %v248_v47 = vadd.f32 %v247_v31, %v246_v39 }
 0x195   :  { %v234_v42 = vmul.f32 %v218_v40, %v783_v28  ;;  %v226_v43 = vmul.f32 %v183_v41, %v788_v29 }
 0x197   :  { %v270_v48 = vsel %vm235_vm3, %v234_v42, 0.0  ;;  %v249_v50 = vsel %vm235_vm3, %v226_v43, 0.0 }
 0x198   :  { %v271_v52 = vadd.f32 %v270_v48, %v269_v44  ;;  %v250_v53 = vadd.f32 %v249_v50, %v248_v47 }
 0x19a   :  { %v272_v54 = vrot.slane %v271_v52, 4  ;;  %v251_v55 = vrot.slane %v250_v53, 4 }
 0x19c   :  { %v273_v56 = vadd.f32 %v272_v54, %v271_v52  ;;  %v252_v57 = vadd.f32 %v251_v55, %v250_v53 }
 0x19e   :  { %v274_v58 = vrot.slane %v273_v56, 2  ;;  %v253_v61 = vrot.slane %v252_v57, 2 }
 0x1a0   :  { %v275_v62 = vadd.f32 %v274_v58, %v273_v56  ;;  %v254_v63 = vadd.f32 %v253_v61, %v252_v57 }
 0x1a2   :  { %v255_v0 = vrot.slane %v254_v63, 1  ;;  %v276_v1 = vrot.slane %v275_v62, 1 }
 0x1a4   :  { %v256_v2 = vadd.f32 %v255_v0, %v254_v63  ;;  %v277_v3 = vadd.f32 %v276_v1, %v275_v62 }
 0x1a6   :  { %v281_v4 = vsel %vm280_vm4, %v277_v3, %v256_v2 }
 0x1a7   :  { %v284_v5 = vsel %vm283_vm5, %v281_v4, -inf }
 0x1a8   :  { %285 = vmax.xlane.f32.xlu0 %v284_v5 }
 0x235   :  { %v286_v6 = vpop.xlane.xlu0 %285 }
 0x236   :  { %v288_v7 = vrot.slane %v286_v6, 1  ;;  %v291_v8 = vsub.f32 %v256_v2, %v286_v6  ;;  %v401_v2 = vand.u32 127, %v149_v20 }
 0x238   :  { %v292_v9 = vsub.f32 %v277_v3, %v288_v7  ;;  %v293_v10 = vmul.f32 1.442695, %v291_v8  ;;  %v406_v3 = vadd.s32 4294967288, %v401_v2  ;;  %v413_v6 = vadd.s32 4294967280, %v401_v2 }
 0x239   :  { %v404_v8 = vsub.s32 %v401_v2, %v677_v21 }
 0x23a   :  { %v295_v13 = vmul.f32 1.442695, %v292_v9  ;;  %v409_v5 = vsub.s32 %v406_v3, %v677_v21  ;;  %v420_v9 = vadd.s32 4294967272, %v401_v2 }
 0x23c   :  { %572 = vpow2.f32 %v295_v13 }
 0x23d   :  { %574 = vpow2.f32 %v293_v10 }
 0x246   :  { %v573_v14 = vpop.eup %572 }
 0x247   :  { %v299_v15 = vrot.slane %v573_v14, 7  ;;  %v575_v16 = vpop.eup %574 }
 0x249   :  { %v300_v17 = vsel %vm280_vm4, %v299_v15, %v575_v16  ;;  %v427_v15 = vadd.s32 4294967264, %v401_v2 }
 0x24a   :  { %v302_v18 = vsel %vm283_vm5, %v300_v17, 0.0 }
 0x24b   :  { %303 = vadd.xlane.f32.xlu1 %v302_v18  ;;  %v434_v18 = vadd.s32 4294967256, %v401_v2 }
 0x2d8   :  { %v304_v19 = vpop.xlane.xlu1 %303 }
 0x2d9   :  { %576 = vrcp.f32 %v304_v19  ;;  %v423_v19 = vsub.s32 %v420_v9, %v677_v21 }
 0x2e3   :  { %v577_v23 = vpop.eup %576 }
 0x2e4   :  { %v307_v24 = vrot.slane %v577_v23, 1  ;;  %v310_v25 = vmul.f32 %v577_v23, %v575_v16  ;;  %v441_v23 = vadd.s32 4294967248, %v401_v2 }
 0x2e6   :  { %v311_v26 = vmul.f32 %v573_v14, %v307_v24  ;;  %v315_v27 = vrot.slane %v310_v25, %v680_v22  ;;  %v416_v14 = vsub.s32 %v413_v6, %v677_v21 }
 0x2e8   :  { %v322_v30 = vmul.f32 %v315_v27, %v712_v38  ;;  %v320_v31 = vmul.f32 %v315_v27, %v702_v36  ;;  %v319_v32 = vrot.slane %v311_v26, %v680_v22  ;;  %v323_v41 = vmul.f32 %v315_v27, %v726_v46 }
 0x2e9   :  { %v321_v42 = vmul.f32 %v315_v27, %v692_v34  ;;  %v324_v38 = vmul.f32 %v315_v27, %v738_v51  ;;  %v325_v46 = vmul.f32 %v315_v27, %v754_v60 }
 0x2ea   :  { %v342_v39 = vsel %vm235_vm3, %v322_v30, 0.0  ;;  %v336_v40 = vsel %vm235_vm3, %v320_v31, 0.0  ;;  %v345_v43 = vsel %vm235_vm3, %v323_v41, 0.0  ;;  %v329_v36 = vmul.f32 %v319_v32, %v687_v33 }
 0x2eb   :  { %343 = vadd.xlane.f32.xlu1 %v342_v39  ;;  %337 = vadd.xlane.f32.xlu0 %v336_v40  ;;  %v339_v44 = vsel %vm235_vm3, %v321_v42, 0.0  ;;  %v348_v22 = vsel %vm235_vm3, %v324_v38, 0.0  ;;  %v330_v34 = vmul.f32 %v319_v32, %v707_v37  ;;  %v351_v48 = vsel %vm235_vm3, %v325_v46, 0.0 }
 0x2ec   :  { %v363_v47 = vsel %vm235_vm3, %v329_v36, 0.0  ;;  %v331_v51 = vmul.f32 %v319_v32, %v721_v45  ;;  %v328_v33 = vmul.f32 %v319_v32, %v697_v35  ;;  %v332_v60 = vmul.f32 %v319_v32, %v733_v49 }
 0x2ed   :  { %v366_v50 = vsel %vm235_vm3, %v330_v34, 0.0  ;;  %v326_v37 = vmul.f32 %v315_v27, %v772_v12  ;;  %v333_v45 = vmul.f32 %v319_v32, %v749_v59  ;;  %v327_v35 = vmul.f32 %v315_v27, %v788_v29 }
 0x2ee   :  { %v369_v52 = vsel %vm235_vm3, %v331_v51, 0.0  ;;  %v360_v53 = vsel %vm235_vm3, %v328_v33, 0.0  ;;  %v372_v54 = vsel %vm235_vm3, %v332_v60, 0.0  ;;  %v334_v49 = vmul.f32 %v319_v32, %v767_v11 }
 0x2ef   :  { %346 = vadd.xlane.f32.xlu1 %v345_v43  ;;  %340 = vadd.xlane.f32.xlu0 %v339_v44  ;;  %v354_v55 = vsel %vm235_vm3, %v326_v37, 0.0  ;;  %v375_v56 = vsel %vm235_vm3, %v333_v45, 0.0  ;;  %v357_v57 = vsel %vm235_vm3, %v327_v35, 0.0  ;;  %v335_v58 = vmul.f32 %v319_v32, %v783_v28 }
 0x2f0   :  { %v378_v12 = vsel %vm235_vm3, %v334_v49, 0.0  ;;  %v448_v27 = vadd.s32 4294967240, %v401_v2  ;;  %v430_v31 = vsub.s32 %v427_v15, %v677_v21  ;;  %v437_v40 = vsub.s32 %v434_v18, %v677_v21 }
 0x2f1   :  { %v381_v61 = vsel %vm235_vm3, %v335_v58, 0.0  ;;  %v444_v43 = vsub.s32 %v441_v23, %v677_v21 }
 0x2f2   :  { %v451_v36 = vsub.s32 %v448_v27, %v677_v21 }
 0x2f3   :  { %349 = vadd.xlane.f32.xlu1 %v348_v22  ;;  %364 = vadd.xlane.f32.xlu0 %v363_v47 }
 0x2f7   :  { %352 = vadd.xlane.f32.xlu1 %v351_v48  ;;  %367 = vadd.xlane.f32.xlu0 %v366_v50 }
 0x2fb   :  { %370 = vadd.xlane.f32.xlu0 %v369_v52  ;;  %361 = vadd.xlane.f32.xlu1 %v360_v53 }
 0x2ff   :  { %373 = vadd.xlane.f32.xlu0 %v372_v54  ;;  %355 = vadd.xlane.f32.xlu1 %v354_v55 }
 0x303   :  { %376 = vadd.xlane.f32.xlu0 %v375_v56  ;;  %358 = vadd.xlane.f32.xlu1 %v357_v57 }
 0x307   :  { %379 = vadd.xlane.f32.xlu0 %v378_v12 }
 0x30b   :  { %382 = vadd.xlane.f32.xlu0 %v381_v61 }
 0x378   :  { %v344_v59 = vpop.xlane.xlu1 %343  ;;  %v338_v29 = vpop.xlane.xlu0 %337 }
 0x379   :  { %v405_v17 = vrot.slane %v338_v29, %v404_v8  ;;  %v417_v30 = vrot.slane %v344_v59, %v416_v14 }
 0x37c   :  { %v347_v62 = vpop.xlane.xlu1 %346  ;;  %v341_v63 = vpop.xlane.xlu0 %340 }
 0x37d   :  { %v410_v10 = vrot.slane %v341_v63, %v409_v5  ;;  %v424_v44 = vrot.slane %v347_v62, %v423_v19 }
 0x37f   :  { %v412_v25 = vsel %vm411_vm6, %v410_v10, %v405_v17 }
 0x380   :  { %v350_v0 = vpop.xlane.xlu1 %349  ;;  %v365_v1 = vpop.xlane.xlu0 %364  ;;  %v419_v41 = vsel %vm418_vm7, %v417_v30, %v412_v25 }
 0x381   :  { %v462_v20 = vrot.slane %v365_v1, %v409_v5  ;;  %v431_v22 = vrot.slane %v350_v0, %v430_v31  ;;  %v426_v48 = vsel %vm425_vm8, %v424_v44, %v419_v41 }
 0x383   :  { %v433_v37 = vsel %vm432_vm9, %v431_v22, %v426_v48 }
 0x384   :  { %v353_v11 = vpop.xlane.xlu1 %352  ;;  %v368_v4 = vpop.xlane.xlu0 %367 }
 0x385   :  { %v467_v32 = vrot.slane %v368_v4, %v416_v14  ;;  %v438_v50 = vrot.slane %v353_v11, %v437_v40 }
 0x387   :  { %v440_v21 = vsel %vm439_vm10, %v438_v50, %v433_v37 }
 0x388   :  { %v371_v7 = vpop.xlane.xlu0 %370  ;;  %v362_v28 = vpop.xlane.xlu1 %361 }
 0x389   :  { %v458_v13 = vrot.slane %v362_v28, %v404_v8  ;;  %v472_v38 = vrot.slane %v371_v7, %v423_v19 }
 0x38b   :  { %v463_v26 = vsel %vm411_vm6, %v462_v20, %v458_v13 }
 0x38c   :  { %v374_v16 = vpop.xlane.xlu0 %373  ;;  %v356_v24 = vpop.xlane.xlu1 %355  ;;  %v468_v42 = vsel %vm418_vm7, %v467_v32, %v463_v26 }
 0x38d   :  { %v477_v47 = vrot.slane %v374_v16, %v430_v31  ;;  %v473_v51 = vsel %vm425_vm8, %v472_v38, %v468_v42  ;;  %v445_v52 = vrot.slane %v356_v24, %v444_v43 }
 0x38f   :  { %v478_v54 = vsel %vm432_vm9, %v477_v47, %v473_v51  ;;  %v447_v56 = vsel %vm446_vm11, %v445_v52, %v440_v21 }
 0x390   :  { %v377_v39 = vpop.xlane.xlu0 %376  ;;  %v359_v46 = vpop.xlane.xlu1 %358 }
 0x391   :  { %v482_v33 = vrot.slane %v377_v39, %v437_v40  ;;  %v452_v60 = vrot.slane %v359_v46, %v451_v36 }
 0x393   :  { %v483_v45 = vsel %vm439_vm10, %v482_v33, %v478_v54  ;;  %v454_v49 = vsel %vm453_vm12, %v452_v60, %v447_v56 }
 0x394   :  { %v380_v34 = vpop.xlane.xlu0 %379 }
 0x395   :  { %v487_v53 = vrot.slane %v380_v34, %v444_v43 }
 0x397   :  { %v488_v57 = vsel %vm446_vm11, %v487_v53, %v483_v45 }
 0x398   :  { %v383_v55 = vpop.xlane.xlu0 %382 }
 0x399   :  { %v492_v35 = vrot.slane %v383_v55, %v451_v36 }
 0x39b   :  { %v493_v12 = vsel %vm453_vm12, %v492_v35, %v488_v57 }
 0x39c   :  { %v494_v58 = vsel %vm280_vm4, %v493_v12, %v454_v49 }
 0x39d   :  { %497 = vst.msk [vmem:[#allocation2] sm:$0x3] %vm496_vm13, %v494_v58 }
 0x39e   :  { %589 = shalt.err (!%p586_p4)
}
 0x39f   :  { %s590_s13 = scalar_lea.hbm %s860_s4, 32 }
 0x3a0   :  { %p591_p5 = scmp.ne.s32.totalorder %s860_s4, %s590_s13  ;;  %p594_p6 = scmp.lt.u32.totalorder %s590_s13, %s860_s4 }
 0x3a2   :  { %p596_p7 = pnand %p594_p6, %p591_p5 }
 0x3a4   :  { %599 = shalt.err (!%p596_p7)
}
 0x3a5   :  { %507 = dma.vmem_to_hbm [thread:$0]  %s505_s9, 32, %s860_s4, [#allocation3]  }
 0x3a6   :  { %600 = dma.done.wait [#allocation3], 32  }
 0x3a7   :  { %601 = vsyncadd [#allocation3], 4294967264 }
 0x3a8   :  { %511 = vsyncpa [#allocation3], 1 }

</bundles_post_ra>
